<compile_context>
chip_gen: v5e
topology: v5e:2x2
jax: 0.10.0
libtpu: 0.0.40
codegen_flags: <defaults>
</compile_context>

<pallas_src>
import functools

import jax
import jax.numpy as jnp
from jax.experimental import pallas as pl
from jax.experimental.pallas import tpu as pltpu

EMBEDDING_DIM = 8
LSTM_HIDDEN = 16
VOCAB = 5  # len('NACGT')
GATES = 8 * LSTM_HIDDEN  # 128 fused gate lanes: [i_f i_b f_f f_b o_f o_b g_f g_b]


# --------------------------------------------------------------------------------------
# Kernel
# --------------------------------------------------------------------------------------
def cpg_kernel(tok_ref, ep_ref, whh_wcls_ref, bcls_ref, out_ref, *, batch, seq_len):
    B, T = batch, seq_len
    H2 = 2 * LSTM_HIDDEN      # 32  : packed [fwd | bwd] hidden width
    G = GATES                 # 128 : fused gate width (4 gates x 2 directions)
    V2 = 2 * VOCAB            # 10  : merged fwd/bwd one-hot width

    # ---- merged one-hot embedding + ONE input-projection matmul for both directions.
    # tok[t, b, 0] = fwd token at step t, tok[t, b, 1] = VOCAB + reversed token, so the
    # two halves of the (2V, G) table never collide and the bias (folded into the forward
    # half host-side) is added exactly once per row.
    tok = tok_ref[...]                                              # (T, B, 2) int32
    iota = jax.lax.broadcasted_iota(jnp.int32, (T, B, V2), 2)
    oh = ((tok[:, :, 0:1] == iota) | (tok[:, :, 1:2] == iota)).astype(jnp.float32)
    xg = jnp.dot(oh.reshape(T * B, V2), ep_ref[...],
                 preferred_element_type=jnp.float32)                # (T*B, G)
    xg = xg.reshape(T, B, G)                                        # time-major slices

    whh = whh_wcls_ref[:, 0:G]                                      # (2H, 8H) block-struct

    # ---- interleaved forward/backward recurrence: ONE matmul + 3 EUP regions per step.
    h = jnp.zeros((B, H2), jnp.float32)                             # [h_fwd | h_bwd]
    c = jnp.zeros((B, H2), jnp.float32)
    # T is tiny & static -> Python unroll is fine.
    # TODO(synk): for large T switch to lax.fori_loop over a VMEM-scratch xg (pl.ds).
    for s in range(T):
        # Keep the add adjacent to the dot (v7x MRB in-place accumulate).
        gates = xg[s] + jnp.dot(h, whh, preferred_element_type=jnp.float32)
        sig = jax.nn.sigmoid(gates[:, 0:3 * H2])                    # [i_f i_b f_f f_b o_f o_b]
        g_g = jnp.tanh(gates[:, 3 * H2:])                           # [g_f g_b]
        i_g = sig[:, 0:H2]
        f_g = sig[:, H2:2 * H2]
        o_g = sig[:, 2 * H2:3 * H2]
        c = f_g * c + i_g * g_g
        h = o_g * jnp.tanh(c)

    # ---- classifier: ReLU then (B,2H)@(2H,1); wcls was row-permuted host-side so packed
    # [h_fwd | h_bwd] matches torch's cat([hn[-1], hn[-2]]); bcls scalar lives in SMEM.
    feat = jnp.maximum(h, 0.0)                                      # dropout = identity
    wcls = whh_wcls_ref[:, G:G + 1]                                 # (2H, 1) packed column
    out_ref[...] = (jnp.dot(feat, wcls, preferred_element_type=jnp.float32)
                    + bcls_ref[0])


# --------------------------------------------------------------------------------------
# Host-side parameter fusion (pure weight permutations / pre-multiplies; numerically
# identical to the per-direction PyTorch layout).
# --------------------------------------------------------------------------------------
def _fuse_gate_cols(w_f, w_b):
    """(*,4H)[i|f|g|o] per direction -> (*,8H) in [i_f i_b f_f f_b o_f o_b g_f g_b]."""
    H = LSTM_HIDDEN

    def split(w):
        return w[:, 0:H], w[:, H:2 * H], w[:, 2 * H:3 * H], w[:, 3 * H:4 * H]

    i_f, f_f, g_f, o_f = split(w_f)
    i_b, f_b, g_b, o_b = split(w_b)
    return jnp.concatenate([i_f, i_b, f_f, f_b, o_f, o_b, g_f, g_b], axis=1)


def _prepare_fused(params):
    E, H = EMBEDDING_DIM, LSTM_HIDDEN
    z_ih = jnp.zeros((E, 4 * H), jnp.float32)
    # embedding table pre-multiplied into the (column-fused, direction-masked) W_ih.
    emb_proj_f = params["emb"] @ _fuse_gate_cols(params["wih_f"], z_ih)     # (V, 8H)
    emb_proj_b = params["emb"] @ _fuse_gate_cols(z_ih, params["wih_b"])     # (V, 8H)
    b_fused = _fuse_gate_cols(params["b_f"], params["b_b"])                 # (1, 8H)
    # Fold the bias into the FORWARD half only: every one-hot row has exactly one forward
    # hit, so each xg row receives b_fused exactly once.
    ep_table = jnp.concatenate([emb_proj_f + b_fused, emb_proj_b], axis=0)  # (2V, 8H)

    z_hh = jnp.zeros((H, 4 * H), jnp.float32)
    whh_fused = _fuse_gate_cols(                                            # (2H, 8H)
        jnp.concatenate([params["whh_f"], z_hh], axis=0),   # fwd hidden -> fwd gate cols
        jnp.concatenate([z_hh, params["whh_b"]], axis=0))   # bwd hidden -> bwd gate cols

    # torch concat order is [hn[-1]=h_bwd, hn[-2]=h_fwd]; packed state is [h_fwd|h_bwd].
    wcls_fused = jnp.concatenate([params["wcls"][H:], params["wcls"][:H]], axis=0)
    # Pack wcls as a spare lane-column alongside whh: one DMA for both.
    whh_wcls = jnp.concatenate([whh_fused, wcls_fused], axis=1)             # (2H, 8H+1)
    return ep_table, whh_wcls


def cpg_predictor(tokens, params):
    """tokens: (B, T) int32.  Returns logits (B, 1) f32."""
    B, T = tokens.shape
    ep_table, whh_wcls = _prepare_fused(params)
    bcls = params["bcls"].reshape(1).astype(jnp.float32)

    # Layout plumbing in the wrapper: time-major (T, B, 2) token pairs — column 0 is the
    # forward token, column 1 the time-reversed token offset by VOCAB (indexes the
    # backward half of ep_table) — so the kernel never transposes / reverses anything.
    tok_f = tokens.T[:, :, None].astype(jnp.int32)                       # (T, B, 1)
    tok_b = (tokens[:, ::-1].T[:, :, None] + VOCAB).astype(jnp.int32)    # (T, B, 1)
    tok_pair = jnp.concatenate([tok_f, tok_b], axis=2)                   # (T, B, 2)

    # Batch grid: fills all 8 sublanes per tile and (when B > 8) pipelines tiles /
    # shards them across v7x's two TensorCores via the "parallel" semantics.
    TILE_B = 8 if B % 8 == 0 else B
    grid = (B // TILE_B,)
    G = GATES

    kernel = functools.partial(cpg_kernel, batch=TILE_B, seq_len=T)
    return pl.pallas_call(
        kernel,
        out_shape=jax.ShapeDtypeStruct((B, 1), jnp.float32),
        grid=grid,
        in_specs=[
            pl.BlockSpec((T, TILE_B, 2), lambda i: (0, i, 0)),
            pl.BlockSpec((2 * VOCAB, G), lambda i: (0, 0)),
            pl.BlockSpec((2 * LSTM_HIDDEN, G + 1), lambda i: (0, 0)),
            pl.BlockSpec(memory_space=pltpu.MemorySpace.SMEM),
        ],
        out_specs=pl.BlockSpec((TILE_B, 1), lambda i: (i, 0)),
        compiler_params=pltpu.CompilerParams(dimension_semantics=("parallel",)),
    )(tok_pair, ep_table, whh_wcls, bcls)


# --------------------------------------------------------------------------------------
# Synthetic parameters + pure-JAX reference
# --------------------------------------------------------------------------------------
def make_params(key):
    """Deterministic synthetic parameters matching the torch module's shapes.

    LSTM weights are stored pre-transposed so math is x @ W:
      wih_*: (E, 4H), whh_*: (H, 4H), b_* = (bias_ih + bias_hh): (1, 4H)
      wcls:  (2H, 1),  bcls: (1, 1)
    """
    E, H = EMBEDDING_DIM, LSTM_HIDDEN
    ks = jax.random.split(key, 10)
    u = lambda k, shape, s: jax.random.uniform(k, shape, jnp.float32, -s, s)
    s = 1.0 / (H ** 0.5)
    return {
        "emb":   jax.random.normal(ks[0], (VOCAB, E), jnp.float32),
        "wih_f": u(ks[1], (E, 4 * H), s),
        "whh_f": u(ks[2], (H, 4 * H), s),
        "b_f":   u(ks[3], (1, 4 * H), s),
        "wih_b": u(ks[4], (E, 4 * H), s),
        "whh_b": u(ks[5], (H, 4 * H), s),
        "b_b":   u(ks[6], (1, 4 * H), s),
        "wcls":  u(ks[7], (2 * H, 1), 1.0 / (2 * H) ** 0.5),
        "bcls":  u(ks[8], (1, 1), 1.0 / (2 * H) ** 0.5),
    }


def reference(tokens, params):
    """Pure-JAX reference of the same forward pass (eval mode)."""
    H = LSTM_HIDDEN
    emb = params["emb"][tokens]                                   # (B, T, E)
    B, T, _ = emb.shape

    def run_dir(seq, wih, whh, b):
        h = jnp.zeros((B, H), jnp.float32)
        c = jnp.zeros((B, H), jnp.float32)
        for t in range(T):
            x_t = seq[:, t]
            gates = x_t @ wih + h @ whh + b
            i = jax.nn.sigmoid(gates[:, :H])
            f = jax.nn.sigmoid(gates[:, H:2 * H])
            g = jnp.tanh(gates[:, 2 * H:3 * H])
            o = jax.nn.sigmoid(gates[:, 3 * H:])
            c = f * c + i * g
            h = o * jnp.tanh(c)
        return h

    h_f = run_dir(emb, params["wih_f"], params["whh_f"], params["b_f"][0])
    h_b = run_dir(emb[:, ::-1], params["wih_b"], params["whh_b"], params["b_b"][0])
    stacked = jnp.concatenate([h_b, h_f], axis=1)
    return jnp.maximum(stacked, 0.0) @ params["wcls"] + params["bcls"][0]


if __name__ == "__main__":
    key = jax.random.PRNGKey(0)
    k_tok, k_par = jax.random.split(key)
    params = make_params(k_par)

    T = 8
    # B=8 fills the 8 sublanes; B=16 exercises the 2-tile parallel batch grid (2 TCs on
    # v7x); B=2 covers the tiny-batch path (TILE_B = B).
    for B in (8, 16, 2):
        tokens = jax.random.randint(jax.random.fold_in(k_tok, B), (B, T), 0, VOCAB,
                                    dtype=jnp.int32)
        logits = cpg_predictor(tokens, params)
        jax.block_until_ready(logits)
        ref = reference(tokens, params)
        assert logits.shape == (B, 1)
        assert jnp.allclose(logits, ref, atol=1e-4, rtol=1e-4), (B, logits, ref)

    print("KERNEL_OK")
</pallas_src>

<mosaic_0001>
module attributes {stable_mosaic.version = 11 : i64} {
  func.func @cpg_kernel(%arg0: i32, %arg1: memref<8x8x2xi32, #tpu.memory_space<vmem>>, %arg2: memref<10x128xf32, #tpu.memory_space<vmem>>, %arg3: memref<32x129xf32, #tpu.memory_space<vmem>>, %arg4: memref<1xf32, #tpu.memory_space<smem>>, %arg5: memref<8x1xf32, #tpu.memory_space<vmem>>) attributes {dimension_semantics = [#tpu.dimension_semantics<parallel>], iteration_bounds = array<i64: 1>, scalar_prefetch = 0 : i64, scratch_operands = 0 : i64, tpu.core_type = #tpu.core_type<tc>, window_params = [{transform_indices = @transform_0, window_bounds = array<i64: 8, 8, 2>}, {pipeline_mode = #tpu.pipeline_mode<synchronous>, transform_indices = @transform_1, window_bounds = array<i64: 10, 128>}, {pipeline_mode = #tpu.pipeline_mode<synchronous>, transform_indices = @transform_2, window_bounds = array<i64: 32, 129>}, {transform_indices = @transform_3, window_bounds = array<i64: 1>}, {transform_indices = @transform_4, window_bounds = array<i64: 8, 1>}]} {
    %c0 = arith.constant 0 : index
    %c0_0 = arith.constant 0 : index
    %c0_1 = arith.constant 0 : index
    %0 = vector.load %arg1[%c0, %c0_0, %c0_1] : memref<8x8x2xi32, #tpu.memory_space<vmem>>, vector<8x8x2xi32>
    %1 = tpu.iota {dimensions = array<i32: 2>} : vector<8x8x10xi32>
    %2 = vector.extract_strided_slice %0 {offsets = [0, 0, 0], sizes = [8, 8, 1], strides = [1, 1, 1]} : vector<8x8x2xi32> to vector<8x8x1xi32>
    %3 = vector.broadcast %2 : vector<8x8x1xi32> to vector<8x8x10xi32>
    %4 = arith.cmpi eq, %3, %1 : vector<8x8x10xi32>
    %5 = vector.extract_strided_slice %0 {offsets = [0, 0, 1], sizes = [8, 8, 1], strides = [1, 1, 1]} : vector<8x8x2xi32> to vector<8x8x1xi32>
    %6 = vector.broadcast %5 : vector<8x8x1xi32> to vector<8x8x10xi32>
    %7 = arith.cmpi eq, %6, %1 : vector<8x8x10xi32>
    %8 = arith.ori %4, %7 : vector<8x8x10xi1>
    %9 = arith.extui %8 : vector<8x8x10xi1> to vector<8x8x10xi32>
    %10 = arith.sitofp %9 : vector<8x8x10xi32> to vector<8x8x10xf32>
    %11 = vector.shape_cast %10 : vector<8x8x10xf32> to vector<64x10xf32>
    %c0_2 = arith.constant 0 : index
    %c0_3 = arith.constant 0 : index
    %12 = vector.load %arg2[%c0_2, %c0_3] : memref<10x128xf32, #tpu.memory_space<vmem>>, vector<10x128xf32>
    %cst = arith.constant dense<0.000000e+00> : vector<64x128xf32>
    %13 = tpu.matmul %11, %12, %cst {dimension_numbers = #tpu.dot_dimension_numbers<[1], [0], [0], [1], [0, 0, 1, 1], [], []>} : vector<64x10xf32>, vector<10x128xf32>, vector<64x128xf32> -> vector<64x128xf32>
    %14 = vector.shape_cast %13 : vector<64x128xf32> to vector<8x8x128xf32>
    %c0_4 = arith.constant 0 : index
    %c0_5 = arith.constant 0 : index
    %15 = vector.load %arg3[%c0_4, %c0_5] : memref<32x129xf32, #tpu.memory_space<vmem>>, vector<32x128xf32>
    %cst_6 = arith.constant 0.000000e+00 : f32
    %16 = vector.broadcast %cst_6 : f32 to vector<8x32xf32>
    %cst_7 = arith.constant 0.000000e+00 : f32
    %17 = vector.broadcast %cst_7 : f32 to vector<8x32xf32>
    %18 = vector.extract_strided_slice %14 {offsets = [0, 0, 0], sizes = [1, 8, 128], strides = [1, 1, 1]} : vector<8x8x128xf32> to vector<1x8x128xf32>
    %19 = vector.shape_cast %18 : vector<1x8x128xf32> to vector<8x128xf32>
    %cst_8 = arith.constant dense<0.000000e+00> : vector<8x128xf32>
    %20 = tpu.matmul %16, %15, %cst_8 {dimension_numbers = #tpu.dot_dimension_numbers<[1], [0], [0], [1], [0, 0, 1, 1], [], []>} : vector<8x32xf32>, vector<32x128xf32>, vector<8x128xf32> -> vector<8x128xf32>
    %21 = arith.addf %19, %20 : vector<8x128xf32>
    %22 = vector.extract_strided_slice %21 {offsets = [0, 0], sizes = [8, 96], strides = [1, 1]} : vector<8x128xf32> to vector<8x96xf32>
    %23 = arith.negf %22 : vector<8x96xf32>
    %24 = math.exp %23 : vector<8x96xf32>
    %cst_9 = arith.constant 1.000000e+00 : f32
    %25 = vector.broadcast %cst_9 : f32 to vector<8x96xf32>
    %26 = arith.addf %25, %24 : vector<8x96xf32>
    %27 = arith.divf %25, %26 : vector<8x96xf32>
    %28 = vector.extract_strided_slice %21 {offsets = [0, 96], sizes = [8, 32], strides = [1, 1]} : vector<8x128xf32> to vector<8x32xf32>
    %29 = math.tanh %28 : vector<8x32xf32>
    %30 = vector.extract_strided_slice %27 {offsets = [0, 0], sizes = [8, 32], strides = [1, 1]} : vector<8x96xf32> to vector<8x32xf32>
    %31 = vector.extract_strided_slice %27 {offsets = [0, 32], sizes = [8, 32], strides = [1, 1]} : vector<8x96xf32> to vector<8x32xf32>
    %32 = vector.extract_strided_slice %27 {offsets = [0, 64], sizes = [8, 32], strides = [1, 1]} : vector<8x96xf32> to vector<8x32xf32>
    %33 = arith.mulf %31, %17 : vector<8x32xf32>
    %34 = arith.mulf %30, %29 : vector<8x32xf32>
    %35 = arith.addf %33, %34 : vector<8x32xf32>
    %36 = math.tanh %35 : vector<8x32xf32>
    %37 = arith.mulf %32, %36 : vector<8x32xf32>
    %38 = vector.extract_strided_slice %14 {offsets = [1, 0, 0], sizes = [1, 8, 128], strides = [1, 1, 1]} : vector<8x8x128xf32> to vector<1x8x128xf32>
    %39 = vector.shape_cast %38 : vector<1x8x128xf32> to vector<8x128xf32>
    %cst_10 = arith.constant dense<0.000000e+00> : vector<8x128xf32>
    %40 = tpu.matmul %37, %15, %cst_10 {dimension_numbers = #tpu.dot_dimension_numbers<[1], [0], [0], [1], [0, 0, 1, 1], [], []>} : vector<8x32xf32>, vector<32x128xf32>, vector<8x128xf32> -> vector<8x128xf32>
    %41 = arith.addf %39, %40 : vector<8x128xf32>
    %42 = vector.extract_strided_slice %41 {offsets = [0, 0], sizes = [8, 96], strides = [1, 1]} : vector<8x128xf32> to vector<8x96xf32>
    %43 = arith.negf %42 : vector<8x96xf32>
    %44 = math.exp %43 : vector<8x96xf32>
    %cst_11 = arith.constant 1.000000e+00 : f32
    %45 = vector.broadcast %cst_11 : f32 to vector<8x96xf32>
    %46 = arith.addf %45, %44 : vector<8x96xf32>
    %47 = arith.divf %45, %46 : vector<8x96xf32>
    %48 = vector.extract_strided_slice %41 {offsets = [0, 96], sizes = [8, 32], strides = [1, 1]} : vector<8x128xf32> to vector<8x32xf32>
    %49 = math.tanh %48 : vector<8x32xf32>
    %50 = vector.extract_strided_slice %47 {offsets = [0, 0], sizes = [8, 32], strides = [1, 1]} : vector<8x96xf32> to vector<8x32xf32>
    %51 = vector.extract_strided_slice %47 {offsets = [0, 32], sizes = [8, 32], strides = [1, 1]} : vector<8x96xf32> to vector<8x32xf32>
    %52 = vector.extract_strided_slice %47 {offsets = [0, 64], sizes = [8, 32], strides = [1, 1]} : vector<8x96xf32> to vector<8x32xf32>
    %53 = arith.mulf %51, %35 : vector<8x32xf32>
    %54 = arith.mulf %50, %49 : vector<8x32xf32>
    %55 = arith.addf %53, %54 : vector<8x32xf32>
    %56 = math.tanh %55 : vector<8x32xf32>
    %57 = arith.mulf %52, %56 : vector<8x32xf32>
    %58 = vector.extract_strided_slice %14 {offsets = [2, 0, 0], sizes = [1, 8, 128], strides = [1, 1, 1]} : vector<8x8x128xf32> to vector<1x8x128xf32>
    %59 = vector.shape_cast %58 : vector<1x8x128xf32> to vector<8x128xf32>
    %cst_12 = arith.constant dense<0.000000e+00> : vector<8x128xf32>
    %60 = tpu.matmul %57, %15, %cst_12 {dimension_numbers = #tpu.dot_dimension_numbers<[1], [0], [0], [1], [0, 0, 1, 1], [], []>} : vector<8x32xf32>, vector<32x128xf32>, vector<8x128xf32> -> vector<8x128xf32>
    %61 = arith.addf %59, %60 : vector<8x128xf32>
    %62 = vector.extract_strided_slice %61 {offsets = [0, 0], sizes = [8, 96], strides = [1, 1]} : vector<8x128xf32> to vector<8x96xf32>
    %63 = arith.negf %62 : vector<8x96xf32>
    %64 = math.exp %63 : vector<8x96xf32>
    %cst_13 = arith.constant 1.000000e+00 : f32
    %65 = vector.broadcast %cst_13 : f32 to vector<8x96xf32>
    %66 = arith.addf %65, %64 : vector<8x96xf32>
    %67 = arith.divf %65, %66 : vector<8x96xf32>
    %68 = vector.extract_strided_slice %61 {offsets = [0, 96], sizes = [8, 32], strides = [1, 1]} : vector<8x128xf32> to vector<8x32xf32>
    %69 = math.tanh %68 : vector<8x32xf32>
    %70 = vector.extract_strided_slice %67 {offsets = [0, 0], sizes = [8, 32], strides = [1, 1]} : vector<8x96xf32> to vector<8x32xf32>
    %71 = vector.extract_strided_slice %67 {offsets = [0, 32], sizes = [8, 32], strides = [1, 1]} : vector<8x96xf32> to vector<8x32xf32>
    %72 = vector.extract_strided_slice %67 {offsets = [0, 64], sizes = [8, 32], strides = [1, 1]} : vector<8x96xf32> to vector<8x32xf32>
    %73 = arith.mulf %71, %55 : vector<8x32xf32>
    %74 = arith.mulf %70, %69 : vector<8x32xf32>
    %75 = arith.addf %73, %74 : vector<8x32xf32>
    %76 = math.tanh %75 : vector<8x32xf32>
    %77 = arith.mulf %72, %76 : vector<8x32xf32>
    %78 = vector.extract_strided_slice %14 {offsets = [3, 0, 0], sizes = [1, 8, 128], strides = [1, 1, 1]} : vector<8x8x128xf32> to vector<1x8x128xf32>
    %79 = vector.shape_cast %78 : vector<1x8x128xf32> to vector<8x128xf32>
    %cst_14 = arith.constant dense<0.000000e+00> : vector<8x128xf32>
    %80 = tpu.matmul %77, %15, %cst_14 {dimension_numbers = #tpu.dot_dimension_numbers<[1], [0], [0], [1], [0, 0, 1, 1], [], []>} : vector<8x32xf32>, vector<32x128xf32>, vector<8x128xf32> -> vector<8x128xf32>
    %81 = arith.addf %79, %80 : vector<8x128xf32>
    %82 = vector.extract_strided_slice %81 {offsets = [0, 0], sizes = [8, 96], strides = [1, 1]} : vector<8x128xf32> to vector<8x96xf32>
    %83 = arith.negf %82 : vector<8x96xf32>
    %84 = math.exp %83 : vector<8x96xf32>
    %cst_15 = arith.constant 1.000000e+00 : f32
    %85 = vector.broadcast %cst_15 : f32 to vector<8x96xf32>
    %86 = arith.addf %85, %84 : vector<8x96xf32>
    %87 = arith.divf %85, %86 : vector<8x96xf32>
    %88 = vector.extract_strided_slice %81 {offsets = [0, 96], sizes = [8, 32], strides = [1, 1]} : vector<8x128xf32> to vector<8x32xf32>
    %89 = math.tanh %88 : vector<8x32xf32>
    %90 = vector.extract_strided_slice %87 {offsets = [0, 0], sizes = [8, 32], strides = [1, 1]} : vector<8x96xf32> to vector<8x32xf32>
    %91 = vector.extract_strided_slice %87 {offsets = [0, 32], sizes = [8, 32], strides = [1, 1]} : vector<8x96xf32> to vector<8x32xf32>
    %92 = vector.extract_strided_slice %87 {offsets = [0, 64], sizes = [8, 32], strides = [1, 1]} : vector<8x96xf32> to vector<8x32xf32>
    %93 = arith.mulf %91, %75 : vector<8x32xf32>
    %94 = arith.mulf %90, %89 : vector<8x32xf32>
    %95 = arith.addf %93, %94 : vector<8x32xf32>
    %96 = math.tanh %95 : vector<8x32xf32>
    %97 = arith.mulf %92, %96 : vector<8x32xf32>
    %98 = vector.extract_strided_slice %14 {offsets = [4, 0, 0], sizes = [1, 8, 128], strides = [1, 1, 1]} : vector<8x8x128xf32> to vector<1x8x128xf32>
    %99 = vector.shape_cast %98 : vector<1x8x128xf32> to vector<8x128xf32>
    %cst_16 = arith.constant dense<0.000000e+00> : vector<8x128xf32>
    %100 = tpu.matmul %97, %15, %cst_16 {dimension_numbers = #tpu.dot_dimension_numbers<[1], [0], [0], [1], [0, 0, 1, 1], [], []>} : vector<8x32xf32>, vector<32x128xf32>, vector<8x128xf32> -> vector<8x128xf32>
    %101 = arith.addf %99, %100 : vector<8x128xf32>
    %102 = vector.extract_strided_slice %101 {offsets = [0, 0], sizes = [8, 96], strides = [1, 1]} : vector<8x128xf32> to vector<8x96xf32>
    %103 = arith.negf %102 : vector<8x96xf32>
    %104 = math.exp %103 : vector<8x96xf32>
    %cst_17 = arith.constant 1.000000e+00 : f32
    %105 = vector.broadcast %cst_17 : f32 to vector<8x96xf32>
    %106 = arith.addf %105, %104 : vector<8x96xf32>
    %107 = arith.divf %105, %106 : vector<8x96xf32>
    %108 = vector.extract_strided_slice %101 {offsets = [0, 96], sizes = [8, 32], strides = [1, 1]} : vector<8x128xf32> to vector<8x32xf32>
    %109 = math.tanh %108 : vector<8x32xf32>
    %110 = vector.extract_strided_slice %107 {offsets = [0, 0], sizes = [8, 32], strides = [1, 1]} : vector<8x96xf32> to vector<8x32xf32>
    %111 = vector.extract_strided_slice %107 {offsets = [0, 32], sizes = [8, 32], strides = [1, 1]} : vector<8x96xf32> to vector<8x32xf32>
    %112 = vector.extract_strided_slice %107 {offsets = [0, 64], sizes = [8, 32], strides = [1, 1]} : vector<8x96xf32> to vector<8x32xf32>
    %113 = arith.mulf %111, %95 : vector<8x32xf32>
    %114 = arith.mulf %110, %109 : vector<8x32xf32>
    %115 = arith.addf %113, %114 : vector<8x32xf32>
    %116 = math.tanh %115 : vector<8x32xf32>
    %117 = arith.mulf %112, %116 : vector<8x32xf32>
    %118 = vector.extract_strided_slice %14 {offsets = [5, 0, 0], sizes = [1, 8, 128], strides = [1, 1, 1]} : vector<8x8x128xf32> to vector<1x8x128xf32>
    %119 = vector.shape_cast %118 : vector<1x8x128xf32> to vector<8x128xf32>
    %cst_18 = arith.constant dense<0.000000e+00> : vector<8x128xf32>
    %120 = tpu.matmul %117, %15, %cst_18 {dimension_numbers = #tpu.dot_dimension_numbers<[1], [0], [0], [1], [0, 0, 1, 1], [], []>} : vector<8x32xf32>, vector<32x128xf32>, vector<8x128xf32> -> vector<8x128xf32>
    %121 = arith.addf %119, %120 : vector<8x128xf32>
    %122 = vector.extract_strided_slice %121 {offsets = [0, 0], sizes = [8, 96], strides = [1, 1]} : vector<8x128xf32> to vector<8x96xf32>
    %123 = arith.negf %122 : vector<8x96xf32>
    %124 = math.exp %123 : vector<8x96xf32>
    %cst_19 = arith.constant 1.000000e+00 : f32
    %125 = vector.broadcast %cst_19 : f32 to vector<8x96xf32>
    %126 = arith.addf %125, %124 : vector<8x96xf32>
    %127 = arith.divf %125, %126 : vector<8x96xf32>
    %128 = vector.extract_strided_slice %121 {offsets = [0, 96], sizes = [8, 32], strides = [1, 1]} : vector<8x128xf32> to vector<8x32xf32>
    %129 = math.tanh %128 : vector<8x32xf32>
    %130 = vector.extract_strided_slice %127 {offsets = [0, 0], sizes = [8, 32], strides = [1, 1]} : vector<8x96xf32> to vector<8x32xf32>
    %131 = vector.extract_strided_slice %127 {offsets = [0, 32], sizes = [8, 32], strides = [1, 1]} : vector<8x96xf32> to vector<8x32xf32>
    %132 = vector.extract_strided_slice %127 {offsets = [0, 64], sizes = [8, 32], strides = [1, 1]} : vector<8x96xf32> to vector<8x32xf32>
    %133 = arith.mulf %131, %115 : vector<8x32xf32>
    %134 = arith.mulf %130, %129 : vector<8x32xf32>
    %135 = arith.addf %133, %134 : vector<8x32xf32>
    %136 = math.tanh %135 : vector<8x32xf32>
    %137 = arith.mulf %132, %136 : vector<8x32xf32>
    %138 = vector.extract_strided_slice %14 {offsets = [6, 0, 0], sizes = [1, 8, 128], strides = [1, 1, 1]} : vector<8x8x128xf32> to vector<1x8x128xf32>
    %139 = vector.shape_cast %138 : vector<1x8x128xf32> to vector<8x128xf32>
    %cst_20 = arith.constant dense<0.000000e+00> : vector<8x128xf32>
    %140 = tpu.matmul %137, %15, %cst_20 {dimension_numbers = #tpu.dot_dimension_numbers<[1], [0], [0], [1], [0, 0, 1, 1], [], []>} : vector<8x32xf32>, vector<32x128xf32>, vector<8x128xf32> -> vector<8x128xf32>
    %141 = arith.addf %139, %140 : vector<8x128xf32>
    %142 = vector.extract_strided_slice %141 {offsets = [0, 0], sizes = [8, 96], strides = [1, 1]} : vector<8x128xf32> to vector<8x96xf32>
    %143 = arith.negf %142 : vector<8x96xf32>
    %144 = math.exp %143 : vector<8x96xf32>
    %cst_21 = arith.constant 1.000000e+00 : f32
    %145 = vector.broadcast %cst_21 : f32 to vector<8x96xf32>
    %146 = arith.addf %145, %144 : vector<8x96xf32>
    %147 = arith.divf %145, %146 : vector<8x96xf32>
    %148 = vector.extract_strided_slice %141 {offsets = [0, 96], sizes = [8, 32], strides = [1, 1]} : vector<8x128xf32> to vector<8x32xf32>
    %149 = math.tanh %148 : vector<8x32xf32>
    %150 = vector.extract_strided_slice %147 {offsets = [0, 0], sizes = [8, 32], strides = [1, 1]} : vector<8x96xf32> to vector<8x32xf32>
    %151 = vector.extract_strided_slice %147 {offsets = [0, 32], sizes = [8, 32], strides = [1, 1]} : vector<8x96xf32> to vector<8x32xf32>
    %152 = vector.extract_strided_slice %147 {offsets = [0, 64], sizes = [8, 32], strides = [1, 1]} : vector<8x96xf32> to vector<8x32xf32>
    %153 = arith.mulf %151, %135 : vector<8x32xf32>
    %154 = arith.mulf %150, %149 : vector<8x32xf32>
    %155 = arith.addf %153, %154 : vector<8x32xf32>
    %156 = math.tanh %155 : vector<8x32xf32>
    %157 = arith.mulf %152, %156 : vector<8x32xf32>
    %158 = vector.extract_strided_slice %14 {offsets = [7, 0, 0], sizes = [1, 8, 128], strides = [1, 1, 1]} : vector<8x8x128xf32> to vector<1x8x128xf32>
    %159 = vector.shape_cast %158 : vector<1x8x128xf32> to vector<8x128xf32>
    %cst_22 = arith.constant dense<0.000000e+00> : vector<8x128xf32>
    %160 = tpu.matmul %157, %15, %cst_22 {dimension_numbers = #tpu.dot_dimension_numbers<[1], [0], [0], [1], [0, 0, 1, 1], [], []>} : vector<8x32xf32>, vector<32x128xf32>, vector<8x128xf32> -> vector<8x128xf32>
    %161 = arith.addf %159, %160 : vector<8x128xf32>
    %162 = vector.extract_strided_slice %161 {offsets = [0, 0], sizes = [8, 96], strides = [1, 1]} : vector<8x128xf32> to vector<8x96xf32>
    %163 = arith.negf %162 : vector<8x96xf32>
    %164 = math.exp %163 : vector<8x96xf32>
    %cst_23 = arith.constant 1.000000e+00 : f32
    %165 = vector.broadcast %cst_23 : f32 to vector<8x96xf32>
    %166 = arith.addf %165, %164 : vector<8x96xf32>
    %167 = arith.divf %165, %166 : vector<8x96xf32>
    %168 = vector.extract_strided_slice %161 {offsets = [0, 96], sizes = [8, 32], strides = [1, 1]} : vector<8x128xf32> to vector<8x32xf32>
    %169 = math.tanh %168 : vector<8x32xf32>
    %170 = vector.extract_strided_slice %167 {offsets = [0, 0], sizes = [8, 32], strides = [1, 1]} : vector<8x96xf32> to vector<8x32xf32>
    %171 = vector.extract_strided_slice %167 {offsets = [0, 32], sizes = [8, 32], strides = [1, 1]} : vector<8x96xf32> to vector<8x32xf32>
    %172 = vector.extract_strided_slice %167 {offsets = [0, 64], sizes = [8, 32], strides = [1, 1]} : vector<8x96xf32> to vector<8x32xf32>
    %173 = arith.mulf %171, %155 : vector<8x32xf32>
    %174 = arith.mulf %170, %169 : vector<8x32xf32>
    %175 = arith.addf %173, %174 : vector<8x32xf32>
    %176 = math.tanh %175 : vector<8x32xf32>
    %177 = arith.mulf %172, %176 : vector<8x32xf32>
    %cst_24 = arith.constant 0.000000e+00 : f32
    %178 = vector.broadcast %cst_24 : f32 to vector<8x32xf32>
    %179 = arith.maximumf %177, %178 : vector<8x32xf32>
    %c0_25 = arith.constant 0 : index
    %c128 = arith.constant 128 : index
    %180 = vector.load %arg3[%c0_25, %c128] : memref<32x129xf32, #tpu.memory_space<vmem>>, vector<32x1xf32>
    %cst_26 = arith.constant dense<0.000000e+00> : vector<8x1xf32>
    %181 = tpu.matmul %179, %180, %cst_26 {dimension_numbers = #tpu.dot_dimension_numbers<[1], [0], [0], [1], [0, 0, 1, 1], [], []>} : vector<8x32xf32>, vector<32x1xf32>, vector<8x1xf32> -> vector<8x1xf32>
    %c0_27 = arith.constant 0 : index
    %182 = memref.load %arg4[%c0_27] : memref<1xf32, #tpu.memory_space<smem>>
    %183 = vector.broadcast %182 : f32 to vector<8x1xf32>
    %184 = arith.addf %181, %183 : vector<8x1xf32>
    %c0_28 = arith.constant 0 : index
    %c0_29 = arith.constant 0 : index
    %185 = vector.load %arg5[%c0_28, %c0_29] : memref<8x1xf32, #tpu.memory_space<vmem>>, vector<8x1xf32>
    tpu.vector_store %arg5[%c0_28, %c0_29], %184 {strides = array<i32>} : memref<8x1xf32, #tpu.memory_space<vmem>>, vector<8x1xf32>,
    return
  }
  func.func @transform_0(%arg0: i32) -> (i32, i32, i32) {
    %c0_i32 = arith.constant 0 : i32
    %c0_i32_0 = arith.constant 0 : i32
    %c0_i32_1 = arith.constant 0 : i32
    return %c0_i32, %arg0, %c0_i32_0 : i32, i32, i32
  }
  func.func @transform_1(%arg0: i32) -> (i32, i32) {
    %c0_i32 = arith.constant 0 : i32
    %c0_i32_0 = arith.constant 0 : i32
    %c0_i32_1 = arith.constant 0 : i32
    return %c0_i32, %c0_i32_0 : i32, i32
  }
  func.func @transform_2(%arg0: i32) -> (i32, i32) {
    %c0_i32 = arith.constant 0 : i32
    %c0_i32_0 = arith.constant 0 : i32
    %c0_i32_1 = arith.constant 0 : i32
    return %c0_i32, %c0_i32_0 : i32, i32
  }
  func.func @transform_3(%arg0: i32) -> i32 {
    %c0_i32 = arith.constant 0 : i32
    %c0_i32_0 = arith.constant 0 : i32
    return %c0_i32 : i32
  }
  func.func @transform_4(%arg0: i32) -> (i32, i32) {
    %c0_i32 = arith.constant 0 : i32
    %c0_i32_0 = arith.constant 0 : i32
    return %arg0, %c0_i32 : i32, i32
  }
}

</mosaic_0001>

<bundles_post_ra>
// kernel: tpu_custom_call.1
= control target key start
LH: loop header
LB: loop body
LE: loop exit
PB: predicated region body
PF: predicated region fallthrough
CT: control target
= control target key end

     0   :  { %v850_v0 = vmov 0   ;;  %v851_v3 = vmov 1   ;;  %vm143_vm0 = vcmask 1041408   ;;  %v26_v13 = vlaneseq  ;;  %s853_s6 = smov 32   ;;  %s854_s11 = smov 64   ;;  %s1083_s0 = inlined_call_operand.vmem [shape: s32[8,8,2], index: 0, kind: input, shape index: {}]   ;;  %s1084_s1 = inlined_call_operand.vmem [shape: f32[10,128], index: 1, kind: input, shape index: {}]   ;;  %s1085_s2 = inlined_call_operand.vmem [shape: f32[32,129], index: 2, kind: input, shape index: {}]   ;;  %s1086_s3 = inlined_call_operand.<no memory space> [shape: f32[1], index: 3, kind: input, shape index: {}]   ;;  %s1087_s4 = inlined_call_operand.vmem [shape: f32[8,1], index: 4, kind: output, shape index: {}]  }
   0x1   :  { %777 = vset.pattern.permute.xlu1 %v850_v0  ;;  %775 = vset.pattern.permute.xlu0 %v850_v0  ;;  %v23_v1 = vld [vmem:[%s1083_s0 + $0x28] sm:$0xff]  ;;  %v18_v2 = vld [vmem:[%s1083_s0] sm:$0xff]  ;;  %v894_v4 = vld [vmem:[%s1083_s0 + $0x30] sm:$0xff]  ;;  %vm118_vm5 = vcmask 80896   ;;  %v852_v17 = vmov 0.0  }
   0x2   :  { %44 = vperm.xlu0 %775, %v23_v1   ;;  %29 = vperm.xlu1 %777, %v18_v2   ;;  %v117_v5 = vld [vmem:[%s1084_s1 + $0x8] sm:$0x3]  ;;  %v116_v6 = vld [vmem:[%s1084_s1] sm:$0xff]  ;;  %v908_v7 = vld [vmem:[%s1085_s2 + $0x30] sm:$0xff]  ;;  %v941_v14 = vand.u32 127, %v26_v13 }
   0x3   :  { %779 = vset.pattern.permute.xlu2 %v850_v0  ;;  %741 = vmatpush.msk.msra.mxu0 %vm143_vm0, %v117_v5  ;;  %v913_v8 = vld [vmem:[%s1085_s2 + $0x20] sm:$0xff]  ;;  %v920_v9 = vld [vmem:[%s1085_s2 + $0x10] sm:$0xff]  ;;  %v25_v40 = vld [vmem:[%s1083_s0 + $0x38] sm:$0xff] }
   0x4   :  { %766 = vmatpush.msk.msra.mxu1 %vm143_vm0, %v117_v5  ;;  %767 = vmatpush.msk.msra.mxu2 %vm143_vm0, %v117_v5  ;;  %v928_v10 = vld [vmem:[%s1085_s2] sm:$0xff]  ;;  %v19_v41 = vld [vmem:[%s1083_s0 + $0x8] sm:$0xff] }
   0x5   :  { %162 = vmatpush.msra.mxu0 %v116_v6  ;;  %334 = vmatpush.msra.mxu3 %v908_v7 }
   0x6   :  { %768 = vmatpush.msra.mxu1 %v116_v6  ;;  %769 = vmatpush.msra.mxu2 %v116_v6 }
   0x7   :  { %335 = vmatpush.msra.mxu3 %v913_v8 }
   0x8   :  { %208 = vmatpush.msrb.mxu1 %v908_v7  ;;  %271 = vmatpush.msrb.mxu2 %v908_v7 }
   0x9   :  { %336 = vmatpush.msra.mxu3 %v920_v9 }
   0xa   :  { %776 = vset.pattern.permute.xlu0 %v851_v3  ;;  %778 = vset.pattern.permute.xlu1 %v851_v3 }
   0xb   :  { %76 = vperm.xlu0 %776, %v23_v1   ;;  %61 = vperm.xlu1 %778, %v18_v2  }
   0xc   :  { %209 = vmatpush.msrb.mxu1 %v913_v8  ;;  %272 = vmatpush.msrb.mxu2 %v913_v8 }
   0xd   :  { %337 = vmatpush.msra.mxu3 %v928_v10 }
   0xe   :  { %210 = vmatpush.msrb.mxu1 %v920_v9  ;;  %273 = vmatpush.msrb.mxu2 %v920_v9 }
   0xf   :  { %523 = vmatpush.msrb.mxu3 %v908_v7 }
  0x10   :  { %211 = vmatpush.msrb.mxu1 %v928_v10  ;;  %274 = vmatpush.msrb.mxu2 %v928_v10 }
  0x11   :  { %524 = vmatpush.msrb.mxu3 %v913_v8 }
  0x13   :  { %79 = vperm.xlu0 %776, %v894_v4   ;;  %780 = vset.pattern.permute.xlu1 %v850_v0 }
  0x14   :  { %525 = vmatpush.msrb.mxu3 %v920_v9 }
  0x16   :  { %526 = vmatpush.msrb.mxu3 %v928_v10 }
  0x1b   :  { %782 = vset.pattern.permute.xlu0 %v850_v0 }
  0x74   :  { %v45_v11 = vpop.permute.xlu0 %44  ;;  %v30_v12 = vpop.permute.xlu1 %29 }
  0x75   :  { %vm52_vm1 = vcmp.eq.s32.totalorder %v30_v12, %v941_v14  ;;  %vm57_vm2 = vcmp.eq.s32.totalorder %v45_v11, %v941_v14 }
  0x7d   :  { %v77_v15 = vpop.permute.xlu0 %76  ;;  %v62_v16 = vpop.permute.xlu1 %61 }
  0x7e   :  { %vm89_vm3 = vcmp.eq.s32.totalorder %v77_v15, %v941_v14  ;;  %vm84_vm4 = vcmp.eq.s32.totalorder %v62_v16, %v941_v14 }
  0x7f   :  { %vm97_vm6 = vmor %vm57_vm2, %vm89_vm3 }
  0x80   :  { %vm92_vm7 = vmor %vm52_vm1, %vm84_vm4  ;;  %v738_v18 = vsel %vm97_vm6, 1.0, %v852_v17  ;;  %vm192_vm6 = vcmask 261120  }
  0x81   :  { %v733_v19 = vsel %vm92_vm7, 1.0, %v852_v17  ;;  %747 = vmatmul.msk.f32.vlgmr.msra.gmra.mxu1 %vm118_vm5, %v738_v18 }
  0x82   :  { %742 = vmatmul.msk.f32.vlgmr.msra.gmra.mxu0 %vm118_vm5, %v733_v19  ;;  %397 = vmatpush.msra.mxu1 %v908_v7  ;;  %v20_v19 = vld [vmem:[%s1083_s0 + $0x10] sm:$0xff] }
  0x84   :  { %398 = vmatpush.msra.mxu1 %v913_v8 }
  0x85   :  { %v80_v45 = vpop.permute.xlu0 %79 }
  0x86   :  { %399 = vmatpush.msra.mxu1 %v920_v9  ;;  %vm90_vm12 = vcmp.eq.s32.totalorder %v80_v45, %v941_v14 }
  0x88   :  { %400 = vmatpush.msra.mxu1 %v928_v10 }
  0x89   :  { %212 = vmatmul.f32.vlgmr.msrb.gmra.mxu1 %v852_v17 }
  0x8a   :  { %586 = vmatpush.msrb.mxu1 %v908_v7 }
  0x8c   :  { %587 = vmatpush.msrb.mxu1 %v913_v8 }
  0x8e   :  { %588 = vmatpush.msrb.mxu1 %v920_v9 }
  0x90   :  { %589 = vmatpush.msrb.mxu1 %v928_v10 }
  0xfe   :  { %v960_v20 = vpop.f32.mrf.mxu1 }
  0xff   :  { %v164_v21 = vpop.f32.mrf.mxu0 }
 0x106   :  { %v213_v22 = vpop.f32.mrf.mxu1 }
 0x107   :  { %v216_v23 = vadd.f32 %v213_v22, %v164_v21 }
 0x109   :  { %786 = vtanh.f32 %v216_v23  ;;  %v750_v25 = vmul.f32 -1.442695, %v216_v23 }
 0x10b   :  { %788 = vpow2.f32 %v750_v25 }
 0x10f   :  { %v787_v24 = vpop.eup %786 }
 0x110   :  { %239 = vrot.lane.b32.xlu2 %v787_v24, %s853_s6 }
 0x111   :  { %v789_v26 = vpop.eup %788 }
 0x112   :  { %v220_v27 = vadd.f32 1.0, %v789_v26 }
 0x114   :  { %790 = vrcp.f32 %v220_v27  ;;  %v232_v33 = vand.u32 2147483648, %v220_v27  ;;  %vm226_vm9 = vweird.f32 %v220_v27  ;;  %v230_v34 = vand.u32 2147483647, %v220_v27 }
 0x116   :  { %v233_v36 = vor.u32 1.1754944e-38, %v232_v33  ;;  %vm231_vm11 = vcmp.eq.f32.partialorder %v230_v34, 8.507059e+37 }
 0x11a   :  { %v791_v28 = vpop.eup %790 }
 0x11b   :  { %v222_v29 = vmul.f32 %v791_v28, %v220_v27  ;;  %vm227_vm8 = vweird.f32 %v791_v28 }
 0x11c   :  { %vm228_vm10 = vmor %vm226_vm9, %vm227_vm8 }
 0x11d   :  { %v223_v30 = vsub.f32 1.0, %v222_v29 }
 0x11f   :  { %v224_v31 = vmul.f32 %v791_v28, %v223_v30 }
 0x121   :  { %v225_v32 = vadd.f32 %v791_v28, %v224_v31 }
 0x123   :  { %v229_v35 = vsel %vm228_vm10, %v791_v28, %v225_v32 }
 0x124   :  { %v234_v38 = vsel %vm231_vm11, %v233_v36, %v229_v35 }
 0x125   :  { %v237_v42 = vmul.f32 0.0, %v234_v38 }
 0x16a   :  { %v240_v37 = vpop.permute.xlu2 %239 }
 0x16b   :  { %v242_v39 = vmul.f32 %v240_v37, %v234_v38 }
 0x16d   :  { %244 = vrot.lane.b32.xlu2 %v242_v39, %s853_s6 }
 0x175   :  { %47 = vperm.xlu2 %779, %v894_v4  }
 0x17d   :  { %781 = vset.pattern.permute.xlu2 %v851_v3 }
 0x17e   :  { %82 = vperm.xlu2 %781, %v25_v40  }
 0x186   :  { %64 = vperm.xlu2 %781, %v19_v41  }
 0x1c7   :  { %v245_v43 = vpop.permute.xlu2 %244 }
 0x1c8   :  { %v972_v44 = vadd.f32 %v245_v43, %v237_v42 }
 0x1ca   :  { %792 = vtanh.f32 %v972_v44 }
 0x1cf   :  { %v48_v46 = vpop.permute.xlu2 %47 }
 0x1d0   :  { %v793_v47 = vpop.eup %792  ;;  %vm58_vm13 = vcmp.eq.s32.totalorder %v48_v46, %v941_v14 }
 0x1d1   :  { %vm98_vm14 = vmor %vm58_vm13, %vm90_vm12  ;;  %250 = vrot.lane.b32.xlu1 %v793_v47, %s853_s6 }
 0x1d2   :  { %v739_v48 = vsel %vm98_vm14, 1.0, %v852_v17 }
 0x1d3   :  { %748 = vmatmul.msk.f32.vlgmr.msra.gmra.mxu2 %vm118_vm5, %v739_v48 }
 0x1d4   :  { %460 = vmatpush.msra.mxu2 %v908_v7 }
 0x1d6   :  { %461 = vmatpush.msra.mxu2 %v913_v8 }
 0x1d8   :  { %462 = vmatpush.msra.mxu2 %v920_v9  ;;  %v83_v51 = vpop.permute.xlu2 %82 }
 0x1d9   :  { %50 = vperm.xlu1 %780, %v25_v40   ;;  %vm91_vm15 = vcmp.eq.s32.totalorder %v83_v51, %v941_v14 }
 0x1da   :  { %463 = vmatpush.msra.mxu2 %v928_v10 }
 0x1e0   :  { %v65_v54 = vpop.permute.xlu2 %64 }
 0x1e1   :  { %32 = vperm.xlu1 %780, %v19_v41   ;;  %vm85_vm2 = vcmp.eq.s32.totalorder %v65_v54, %v941_v14 }
 0x243   :  { %v251_v49 = vpop.permute.xlu1 %250 }
 0x244   :  { %v253_v50 = vmul.f32 %v251_v49, %v234_v38  ;;  %v21_v49 = vld [vmem:[%s1083_s0 + $0x18] sm:$0xff] }
 0x246   :  { %255 = vrot.lane.b32.xlu0 %v253_v50, %s854_s11 }
 0x24b   :  { %v51_v52 = vpop.permute.xlu1 %50 }
 0x24c   :  { %vm59_vm0 = vcmp.eq.s32.totalorder %v51_v52, %v941_v14 }
 0x24d   :  { %vm99_vm1 = vmor %vm59_vm0, %vm91_vm15 }
 0x24e   :  { %v740_v53 = vsel %vm99_vm1, 1.0, %v852_v17 }
 0x24f   :  { %749 = vmatmul.msk.f32.gmra.mxu2 %vm118_vm5, %v740_v53 }
 0x253   :  { %v33_v55 = vpop.permute.xlu1 %32 }
 0x254   :  { %vm53_vm3 = vcmp.eq.s32.totalorder %v33_v55, %v941_v14 }
 0x255   :  { %vm93_vm4 = vmor %vm53_vm3, %vm85_vm2 }
 0x256   :  { %v734_v56 = vsel %vm93_vm4, 1.0, %v852_v17  ;;  %v998_v58 = vpop.f32.mrf.mxu2 }
 0x257   :  { %743 = vmatmul.msk.f32.gmra.mxu0 %vm118_vm5, %v734_v56 }
 0x2b8   :  { %v256_v57 = vpop.permute.xlu0 %255 }
 0x2b9   :  { %751 = vmatmul.msk.f32.vlgmr.msrb.gmra.mxu2 %vm192_vm6, %v256_v57 }
 0x2ba   :  { %649 = vmatpush.msrb.mxu2 %v908_v7 }
 0x2bc   :  { %650 = vmatpush.msrb.mxu2 %v913_v8 }
 0x2be   :  { %651 = vmatpush.msrb.mxu2 %v920_v9 }
 0x2c0   :  { %652 = vmatpush.msrb.mxu2 %v928_v10 }
 0x2d2   :  { %v1000_v59 = vpop.f32.mrf.mxu2 }
 0x2d4   :  { %v167_v60 = vpop.f32.mrf.mxu0 }
 0x33c   :  { %v276_v61 = vpop.f32.mrf.mxu2 }
 0x33d   :  { %v279_v62 = vadd.f32 %v276_v61, %v167_v60 }
 0x33f   :  { %794 = vtanh.f32 %v279_v62  ;;  %v752_v1 = vmul.f32 -1.442695, %v279_v62 }
 0x341   :  { %796 = vpow2.f32 %v752_v1 }
 0x345   :  { %v795_v63 = vpop.eup %794 }
 0x346   :  { %302 = vrot.lane.b32.xlu0 %v795_v63, %s853_s6 }
 0x347   :  { %v797_v2 = vpop.eup %796 }
 0x348   :  { %v283_v4 = vadd.f32 1.0, %v797_v2 }
 0x34a   :  { %798 = vrcp.f32 %v283_v4  ;;  %v295_v10 = vand.u32 2147483648, %v283_v4  ;;  %vm289_vm8 = vweird.f32 %v283_v4  ;;  %v293_v11 = vand.u32 2147483647, %v283_v4 }
 0x34c   :  { %v296_v13 = vor.u32 1.1754944e-38, %v295_v10  ;;  %vm294_vm10 = vcmp.eq.f32.partialorder %v293_v11, 8.507059e+37 }
 0x350   :  { %v799_v5 = vpop.eup %798 }
 0x351   :  { %v285_v6 = vmul.f32 %v799_v5, %v283_v4  ;;  %vm290_vm7 = vweird.f32 %v799_v5 }
 0x352   :  { %vm291_vm9 = vmor %vm289_vm8, %vm290_vm7 }
 0x353   :  { %v286_v7 = vsub.f32 1.0, %v285_v6 }
 0x355   :  { %v287_v8 = vmul.f32 %v799_v5, %v286_v7 }
 0x357   :  { %v288_v9 = vadd.f32 %v799_v5, %v287_v8 }
 0x359   :  { %v292_v12 = vsel %vm291_vm9, %v799_v5, %v288_v9 }
 0x35a   :  { %v297_v16 = vsel %vm294_vm10, %v296_v13, %v292_v12 }
 0x35b   :  { %v300_v21 = vmul.f32 %v297_v16, %v972_v44 }
 0x3b8   :  { %v303_v15 = vpop.permute.xlu0 %302 }
 0x3b9   :  { %v305_v18 = vmul.f32 %v303_v15, %v297_v16 }
 0x3bb   :  { %307 = vrot.lane.b32.xlu1 %v305_v18, %s853_s6 }
 0x3c3   :  { %35 = vperm.xlu1 %780, %v20_v19  }
 0x3cb   :  { %783 = vset.pattern.permute.xlu1 %v851_v3 }
 0x42d   :  { %v308_v22 = vpop.permute.xlu1 %307 }
 0x42e   :  { %v310_v23 = vadd.f32 %v308_v22, %v300_v21 }
 0x430   :  { %800 = vtanh.f32 %v310_v23 }
 0x435   :  { %v36_v27 = vpop.permute.xlu1 %35 }
 0x436   :  { %v801_v24 = vpop.eup %800  ;;  %vm54_vm11 = vcmp.eq.s32.totalorder %v36_v27, %v941_v14 }
 0x437   :  { %313 = vrot.lane.b32.xlu2 %v801_v24, %s853_s6 }
 0x43f   :  { %67 = vperm.xlu2 %781, %v20_v19  }
 0x447   :  { %784 = vset.pattern.permute.xlu2 %v850_v0 }
 0x491   :  { %v314_v25 = vpop.permute.xlu2 %313 }
 0x492   :  { %v316_v26 = vmul.f32 %v314_v25, %v297_v16  ;;  %v22_v25 = vld [vmem:[%s1083_s0 + $0x20] sm:$0xff] }
 0x494   :  { %318 = vrot.lane.b32.xlu0 %v316_v26, %s854_s11 }
 0x499   :  { %v68_v28 = vpop.permute.xlu2 %67 }
 0x49a   :  { %vm86_vm12 = vcmp.eq.s32.totalorder %v68_v28, %v941_v14 }
 0x49b   :  { %vm94_vm13 = vmor %vm54_vm11, %vm86_vm12 }
 0x49c   :  { %v735_v29 = vsel %vm94_vm13, 1.0, %v852_v17 }
 0x49d   :  { %744 = vmatmul.msk.f32.gmra.mxu0 %vm118_vm5, %v735_v29 }
 0x506   :  { %v319_v30 = vpop.permute.xlu0 %318 }
 0x507   :  { %753 = vmatmul.msk.f32.vlgmr.msra.gmra.mxu3 %vm192_vm6, %v319_v30 }
 0x51a   :  { %v170_v31 = vpop.f32.mrf.mxu0 }
 0x58a   :  { %v339_v0 = vpop.f32.mrf.mxu3 }
 0x58b   :  { %v342_v32 = vadd.f32 %v339_v0, %v170_v31 }
 0x58d   :  { %802 = vtanh.f32 %v342_v32  ;;  %v754_v34 = vmul.f32 -1.442695, %v342_v32 }
 0x58f   :  { %804 = vpow2.f32 %v754_v34 }
 0x593   :  { %v803_v33 = vpop.eup %802 }
 0x594   :  { %365 = vrot.lane.b32.xlu0 %v803_v33, %s853_s6 }
 0x595   :  { %v805_v35 = vpop.eup %804 }
 0x596   :  { %v346_v36 = vadd.f32 1.0, %v805_v35 }
 0x598   :  { %806 = vrcp.f32 %v346_v36  ;;  %v358_v42 = vand.u32 2147483648, %v346_v36  ;;  %vm352_vm15 = vweird.f32 %v346_v36  ;;  %v356_v43 = vand.u32 2147483647, %v346_v36 }
 0x59a   :  { %v359_v45 = vor.u32 1.1754944e-38, %v358_v42  ;;  %vm357_vm1 = vcmp.eq.f32.partialorder %v356_v43, 8.507059e+37 }
 0x59c   :  { %38 = vperm.xlu0 %782, %v21_v49  }
 0x59e   :  { %v807_v37 = vpop.eup %806 }
 0x59f   :  { %v348_v38 = vmul.f32 %v807_v37, %v346_v36  ;;  %vm353_vm14 = vweird.f32 %v807_v37 }
 0x5a0   :  { %vm354_vm0 = vmor %vm352_vm15, %vm353_vm14 }
 0x5a1   :  { %v349_v39 = vsub.f32 1.0, %v348_v38 }
 0x5a3   :  { %v350_v40 = vmul.f32 %v807_v37, %v349_v39 }
 0x5a4   :  { %785 = vset.pattern.permute.xlu0 %v851_v3 }
 0x5a5   :  { %v351_v41 = vadd.f32 %v807_v37, %v350_v40 }
 0x5a7   :  { %v355_v44 = vsel %vm354_vm0, %v807_v37, %v351_v41 }
 0x5a8   :  { %v360_v47 = vsel %vm357_vm1, %v359_v45, %v355_v44 }
 0x5a9   :  { %v363_v50 = vmul.f32 %v360_v47, %v310_v23 }
 0x606   :  { %v366_v46 = vpop.permute.xlu0 %365 }
 0x607   :  { %v368_v48 = vmul.f32 %v366_v46, %v360_v47 }
 0x609   :  { %370 = vrot.lane.b32.xlu1 %v368_v48, %s853_s6 }
 0x60e   :  { %v39_v56 = vpop.permute.xlu0 %38 }
 0x60f   :  { %vm55_vm2 = vcmp.eq.s32.totalorder %v39_v56, %v941_v14 }
 0x611   :  { %70 = vperm.xlu1 %783, %v21_v49  }
 0x67b   :  { %v371_v51 = vpop.permute.xlu1 %370 }
 0x67c   :  { %v373_v52 = vadd.f32 %v371_v51, %v363_v50 }
 0x67e   :  { %808 = vtanh.f32 %v373_v52 }
 0x683   :  { %v71_v57 = vpop.permute.xlu1 %70 }
 0x684   :  { %v809_v53 = vpop.eup %808  ;;  %vm87_vm3 = vcmp.eq.s32.totalorder %v71_v57, %v941_v14 }
 0x685   :  { %376 = vrot.lane.b32.xlu2 %v809_v53, %s853_s6  ;;  %vm95_vm4 = vmor %vm55_vm2, %vm87_vm3 }
 0x686   :  { %v736_v3 = vsel %vm95_vm4, 1.0, %v852_v17 }
 0x687   :  { %745 = vmatmul.msk.f32.gmra.mxu0 %vm118_vm5, %v736_v3 }
 0x6df   :  { %v377_v54 = vpop.permute.xlu2 %376 }
 0x6e0   :  { %v379_v55 = vmul.f32 %v377_v54, %v360_v47 }
 0x6e2   :  { %381 = vrot.lane.b32.xlu2 %v379_v55, %s854_s11 }
 0x704   :  { %v173_v61 = vpop.f32.mrf.mxu0 }
 0x73c   :  { %v382_v60 = vpop.permute.xlu2 %381 }
 0x73d   :  { %755 = vmatmul.msk.f32.vlgmr.msra.gmra.mxu1 %vm192_vm6, %v382_v60 }
 0x7ba   :  { %v402_v62 = vpop.f32.mrf.mxu1 }
 0x7bb   :  { %v405_v63 = vadd.f32 %v402_v62, %v173_v61 }
 0x7bd   :  { %810 = vtanh.f32 %v405_v63  ;;  %v756_v2 = vmul.f32 -1.442695, %v405_v63 }
 0x7bf   :  { %812 = vpow2.f32 %v756_v2 }
 0x7c3   :  { %v811_v1 = vpop.eup %810 }
 0x7c4   :  { %428 = vrot.lane.b32.xlu1 %v811_v1, %s853_s6 }
 0x7c5   :  { %v813_v4 = vpop.eup %812 }
 0x7c6   :  { %v409_v5 = vadd.f32 1.0, %v813_v4 }
 0x7c8   :  { %814 = vrcp.f32 %v409_v5  ;;  %v421_v11 = vand.u32 2147483648, %v409_v5  ;;  %vm415_vm8 = vweird.f32 %v409_v5  ;;  %v419_v12 = vand.u32 2147483647, %v409_v5 }
 0x7ca   :  { %v422_v15 = vor.u32 1.1754944e-38, %v421_v11  ;;  %vm420_vm10 = vcmp.eq.f32.partialorder %v419_v12, 8.507059e+37 }
 0x7ce   :  { %v815_v6 = vpop.eup %814 }
 0x7cf   :  { %v411_v7 = vmul.f32 %v815_v6, %v409_v5  ;;  %vm416_vm7 = vweird.f32 %v815_v6 }
 0x7d0   :  { %vm417_vm9 = vmor %vm415_vm8, %vm416_vm7 }
 0x7d1   :  { %v412_v8 = vsub.f32 1.0, %v411_v7 }
 0x7d3   :  { %v413_v9 = vmul.f32 %v815_v6, %v412_v8 }
 0x7d5   :  { %v414_v10 = vadd.f32 %v815_v6, %v413_v9 }
 0x7d7   :  { %v418_v13 = vsel %vm417_vm9, %v815_v6, %v414_v10 }
 0x7d8   :  { %v423_v18 = vsel %vm420_vm10, %v422_v15, %v418_v13 }
 0x7d9   :  { %v426_v21 = vmul.f32 %v423_v18, %v373_v52 }
 0x836   :  { %v429_v16 = vpop.permute.xlu1 %428 }
 0x837   :  { %v431_v19 = vmul.f32 %v429_v16, %v423_v18 }
 0x839   :  { %433 = vrot.lane.b32.xlu2 %v431_v19, %s853_s6 }
 0x841   :  { %41 = vperm.xlu2 %784, %v22_v25  }
 0x893   :  { %v434_v22 = vpop.permute.xlu2 %433 }
 0x894   :  { %v436_v23 = vadd.f32 %v434_v22, %v426_v21 }
 0x896   :  { %816 = vtanh.f32 %v436_v23 }
 0x89b   :  { %v42_v28 = vpop.permute.xlu2 %41 }
 0x89c   :  { %v817_v24 = vpop.eup %816  ;;  %vm56_vm11 = vcmp.eq.s32.totalorder %v42_v28, %v941_v14 }
 0x89d   :  { %439 = vrot.lane.b32.xlu0 %v817_v24, %s853_s6 }
 0x8a5   :  { %73 = vperm.xlu0 %785, %v22_v25  }
 0x90f   :  { %v440_v26 = vpop.permute.xlu0 %439 }
 0x910   :  { %v442_v27 = vmul.f32 %v440_v26, %v423_v18 }
 0x912   :  { %444 = vrot.lane.b32.xlu1 %v442_v27, %s854_s11 }
 0x917   :  { %v74_v29 = vpop.permute.xlu0 %73 }
 0x918   :  { %vm88_vm12 = vcmp.eq.s32.totalorder %v74_v29, %v941_v14 }
 0x919   :  { %vm96_vm13 = vmor %vm56_vm11, %vm88_vm12 }
 0x91a   :  { %v737_v30 = vsel %vm96_vm13, 1.0, %v852_v17 }
 0x91b   :  { %746 = vmatmul.msk.f32.gmra.mxu0 %vm118_vm5, %v737_v30 }
 0x984   :  { %v445_v31 = vpop.permute.xlu1 %444 }
 0x985   :  { %757 = vmatmul.msk.f32.vlgmr.msra.gmra.mxu2 %vm192_vm6, %v445_v31 }
 0x998   :  { %v176_v0 = vpop.f32.mrf.mxu0 }
 0xa08   :  { %v465_v32 = vpop.f32.mrf.mxu2 }
 0xa09   :  { %v468_v33 = vadd.f32 %v465_v32, %v176_v0 }
 0xa0b   :  { %818 = vtanh.f32 %v468_v33  ;;  %v758_v35 = vmul.f32 -1.442695, %v468_v33 }
 0xa0d   :  { %820 = vpow2.f32 %v758_v35 }
 0xa11   :  { %v819_v34 = vpop.eup %818 }
 0xa12   :  { %491 = vrot.lane.b32.xlu1 %v819_v34, %s853_s6 }
 0xa13   :  { %v821_v36 = vpop.eup %820 }
 0xa14   :  { %v472_v37 = vadd.f32 1.0, %v821_v36 }
 0xa16   :  { %822 = vrcp.f32 %v472_v37  ;;  %v484_v41 = vand.u32 2147483648, %v472_v37  ;;  %vm478_vm14 = vweird.f32 %v472_v37  ;;  %v482_v42 = vand.u32 2147483647, %v472_v37 }
 0xa18   :  { %v485_v44 = vor.u32 1.1754944e-38, %v484_v41  ;;  %vm483_vm0 = vcmp.eq.f32.partialorder %v482_v42, 8.507059e+37 }
 0xa1c   :  { %v823_v14 = vpop.eup %822 }
 0xa1d   :  { %v474_v38 = vmul.f32 %v823_v14, %v472_v37  ;;  %vm479_vm5 = vweird.f32 %v823_v14 }
 0xa1e   :  { %vm480_vm15 = vmor %vm478_vm14, %vm479_vm5  ;;  %vm727_vm14 = vcmask 7168  }
 0xa1f   :  { %v475_v17 = vsub.f32 1.0, %v474_v38 }
 0xa21   :  { %v476_v39 = vmul.f32 %v823_v14, %v475_v17 }
 0xa23   :  { %v477_v40 = vadd.f32 %v823_v14, %v476_v39 }
 0xa25   :  { %v481_v43 = vsel %vm480_vm15, %v823_v14, %v477_v40 }
 0xa26   :  { %v486_v46 = vsel %vm483_vm0, %v485_v44, %v481_v43 }
 0xa27   :  { %v489_v48 = vmul.f32 %v486_v46, %v436_v23 }
 0xa84   :  { %v492_v45 = vpop.permute.xlu1 %491 }
 0xa85   :  { %v494_v47 = vmul.f32 %v492_v45, %v486_v46 }
 0xa87   :  { %496 = vrot.lane.b32.xlu2 %v494_v47, %s853_s6 }
 0xae1   :  { %v497_v49 = vpop.permute.xlu2 %496 }
 0xae2   :  { %v499_v50 = vadd.f32 %v497_v49, %v489_v48 }
 0xae4   :  { %824 = vtanh.f32 %v499_v50 }
 0xaea   :  { %v825_v51 = vpop.eup %824 }
 0xaeb   :  { %502 = vrot.lane.b32.xlu1 %v825_v51, %s853_s6 }
 0xb5d   :  { %v503_v52 = vpop.permute.xlu1 %502 }
 0xb5e   :  { %v505_v53 = vmul.f32 %v503_v52, %v486_v46 }
 0xb60   :  { %507 = vrot.lane.b32.xlu2 %v505_v53, %s854_s11 }
 0xbba   :  { %v508_v54 = vpop.permute.xlu2 %507 }
 0xbbb   :  { %759 = vmatmul.msk.f32.vlgmr.msrb.gmra.mxu3 %vm192_vm6, %v508_v54 }
 0xc3e   :  { %v528_v55 = vpop.f32.mrf.mxu3 }
 0xc3f   :  { %v531_v56 = vadd.f32 %v528_v55, %v960_v20 }
 0xc41   :  { %826 = vtanh.f32 %v531_v56  ;;  %v760_v3 = vmul.f32 -1.442695, %v531_v56 }
 0xc43   :  { %828 = vpow2.f32 %v760_v3 }
 0xc47   :  { %v827_v57 = vpop.eup %826 }
 0xc48   :  { %554 = vrot.lane.b32.xlu0 %v827_v57, %s853_s6 }
 0xc49   :  { %v829_v60 = vpop.eup %828 }
 0xc4a   :  { %v535_v61 = vadd.f32 1.0, %v829_v60 }
 0xc4c   :  { %830 = vrcp.f32 %v535_v61  ;;  %v547_v5 = vand.u32 2147483648, %v535_v61  ;;  %vm541_vm2 = vweird.f32 %v535_v61  ;;  %v545_v6 = vand.u32 2147483647, %v535_v61 }
 0xc4e   :  { %v548_v7 = vor.u32 1.1754944e-38, %v547_v5  ;;  %vm546_vm4 = vcmp.eq.f32.partialorder %v545_v6, 8.507059e+37  ;;  %v696_v5 = vld [vmem:[%s1085_s2 + $0x8] sm:$0xff] }
 0xc52   :  { %v831_v62 = vpop.eup %830 }
 0xc53   :  { %v537_v63 = vmul.f32 %v831_v62, %v535_v61  ;;  %vm542_vm1 = vweird.f32 %v831_v62 }
 0xc54   :  { %vm543_vm3 = vmor %vm541_vm2, %vm542_vm1 }
 0xc55   :  { %v538_v1 = vsub.f32 1.0, %v537_v63 }
 0xc57   :  { %v539_v2 = vmul.f32 %v831_v62, %v538_v1  ;;  %v699_v1 = vld [vmem:[%s1085_s2 + $0x38] sm:$0xff] }
 0xc58   :  { %719 = vmatpush.msra.mxu3 %v699_v1 }
 0xc59   :  { %v540_v4 = vadd.f32 %v831_v62, %v539_v2  ;;  %v698_v2 = vld [vmem:[%s1085_s2 + $0x28] sm:$0xff] }
 0xc5a   :  { %720 = vmatpush.msra.mxu3 %v698_v2 }
 0xc5b   :  { %v544_v20 = vsel %vm543_vm3, %v831_v62, %v540_v4  ;;  %v697_v4 = vld [vmem:[%s1085_s2 + $0x18] sm:$0xff] }
 0xc5c   :  { %v549_v9 = vsel %vm546_vm4, %v548_v7, %v544_v20  ;;  %721 = vmatpush.msra.mxu3 %v697_v4 }
 0xc5d   :  { %v552_v11 = vmul.f32 %v549_v9, %v499_v50 }
 0xc5e   :  { %722 = vmatpush.msra.mxu3 %v696_v5 }
 0xcba   :  { %v555_v8 = vpop.permute.xlu0 %554 }
 0xcbb   :  { %v557_v10 = vmul.f32 %v555_v8, %v549_v9 }
 0xcbd   :  { %559 = vrot.lane.b32.xlu1 %v557_v10, %s853_s6 }
 0xd2f   :  { %v560_v12 = vpop.permute.xlu1 %559 }
 0xd30   :  { %v562_v13 = vadd.f32 %v560_v12, %v552_v11 }
 0xd32   :  { %832 = vtanh.f32 %v562_v13 }
 0xd38   :  { %v833_v15 = vpop.eup %832 }
 0xd39   :  { %565 = vrot.lane.b32.xlu2 %v833_v15, %s853_s6 }
 0xd93   :  { %v566_v16 = vpop.permute.xlu2 %565 }
 0xd94   :  { %v568_v18 = vmul.f32 %v566_v16, %v549_v9  ;;  %v701_v9 = vstv %s1086_s3 }
 0xd96   :  { %570 = vrot.lane.b32.xlu0 %v568_v18, %s854_s11 }
 0xe08   :  { %v571_v19 = vpop.permute.xlu0 %570 }
 0xe09   :  { %761 = vmatmul.msk.f32.vlgmr.msrb.gmra.mxu1 %vm192_vm6, %v571_v19 }
 0xe86   :  { %v591_v21 = vpop.f32.mrf.mxu1 }
 0xe87   :  { %v594_v22 = vadd.f32 %v591_v21, %v998_v58 }
 0xe89   :  { %834 = vtanh.f32 %v594_v22  ;;  %v762_v24 = vmul.f32 -1.442695, %v594_v22 }
 0xe8b   :  { %836 = vpow2.f32 %v762_v24 }
 0xe8f   :  { %v835_v23 = vpop.eup %834 }
 0xe90   :  { %617 = vrot.lane.b32.xlu1 %v835_v23, %s853_s6 }
 0xe91   :  { %v837_v25 = vpop.eup %836 }
 0xe92   :  { %v598_v26 = vadd.f32 1.0, %v837_v25 }
 0xe94   :  { %838 = vrcp.f32 %v598_v26  ;;  %v610_v0 = vand.u32 2147483648, %v598_v26  ;;  %vm604_vm8 = vweird.f32 %v598_v26  ;;  %v608_v32 = vand.u32 2147483647, %v598_v26 }
 0xe96   :  { %v611_v33 = vor.u32 1.1754944e-38, %v610_v0  ;;  %vm609_vm10 = vcmp.eq.f32.partialorder %v608_v32, 8.507059e+37 }
 0xe9a   :  { %v839_v27 = vpop.eup %838 }
 0xe9b   :  { %v600_v28 = vmul.f32 %v839_v27, %v598_v26  ;;  %vm605_vm7 = vweird.f32 %v839_v27 }
 0xe9c   :  { %vm606_vm9 = vmor %vm604_vm8, %vm605_vm7 }
 0xe9d   :  { %v601_v29 = vsub.f32 1.0, %v600_v28 }
 0xe9f   :  { %v602_v30 = vmul.f32 %v839_v27, %v601_v29 }
 0xea1   :  { %v603_v31 = vadd.f32 %v839_v27, %v602_v30 }
 0xea3   :  { %v607_v58 = vsel %vm606_vm9, %v839_v27, %v603_v31 }
 0xea4   :  { %v612_v35 = vsel %vm609_vm10, %v611_v33, %v607_v58 }
 0xea5   :  { %v615_v37 = vmul.f32 %v612_v35, %v562_v13 }
 0xf02   :  { %v618_v34 = vpop.permute.xlu1 %617 }
 0xf03   :  { %v620_v36 = vmul.f32 %v618_v34, %v612_v35 }
 0xf05   :  { %622 = vrot.lane.b32.xlu2 %v620_v36, %s853_s6 }
 0xf5f   :  { %v623_v14 = vpop.permute.xlu2 %622 }
 0xf60   :  { %v625_v38 = vadd.f32 %v623_v14, %v615_v37 }
 0xf62   :  { %840 = vtanh.f32 %v625_v38 }
 0xf68   :  { %v841_v17 = vpop.eup %840 }
 0xf69   :  { %628 = vrot.lane.b32.xlu0 %v841_v17, %s853_s6 }
 0xfdb   :  { %v629_v39 = vpop.permute.xlu0 %628 }
 0xfdc   :  { %v631_v40 = vmul.f32 %v629_v39, %v612_v35 }
 0xfde   :  { %633 = vrot.lane.b32.xlu1 %v631_v40, %s854_s11 }
0x1050   :  { %v634_v41 = vpop.permute.xlu1 %633 }
0x1051   :  { %763 = vmatmul.msk.f32.vlgmr.msrb.gmra.mxu2 %vm192_vm6, %v634_v41 }
0x10d4   :  { %v654_v42 = vpop.f32.mrf.mxu2 }
0x10d5   :  { %v657_v43 = vadd.f32 %v654_v42, %v1000_v59 }
0x10d7   :  { %842 = vtanh.f32 %v657_v43  ;;  %v764_v45 = vmul.f32 -1.442695, %v657_v43 }
0x10d9   :  { %844 = vpow2.f32 %v764_v45 }
0x10dd   :  { %v843_v44 = vpop.eup %842 }
0x10de   :  { %680 = vrot.lane.b32.xlu2 %v843_v44, %s853_s6 }
0x10df   :  { %v845_v46 = vpop.eup %844 }
0x10e0   :  { %v661_v47 = vadd.f32 1.0, %v845_v46 }
0x10e2   :  { %846 = vrcp.f32 %v661_v47  ;;  %v673_v53 = vand.u32 2147483648, %v661_v47  ;;  %vm667_vm12 = vweird.f32 %v661_v47  ;;  %v671_v54 = vand.u32 2147483647, %v661_v47 }
0x10e4   :  { %v674_v55 = vor.u32 1.1754944e-38, %v673_v53  ;;  %vm672_vm5 = vcmp.eq.f32.partialorder %v671_v54, 8.507059e+37 }
0x10e8   :  { %v847_v48 = vpop.eup %846 }
0x10e9   :  { %v663_v49 = vmul.f32 %v847_v48, %v661_v47  ;;  %vm668_vm11 = vweird.f32 %v847_v48 }
0x10ea   :  { %vm669_vm13 = vmor %vm667_vm12, %vm668_vm11 }
0x10eb   :  { %v664_v50 = vsub.f32 1.0, %v663_v49 }
0x10ed   :  { %v665_v51 = vmul.f32 %v847_v48, %v664_v50 }
0x10ef   :  { %v666_v52 = vadd.f32 %v847_v48, %v665_v51 }
0x10f1   :  { %v670_v59 = vsel %vm669_vm13, %v847_v48, %v666_v52 }
0x10f2   :  { %v675_v57 = vsel %vm672_vm5, %v674_v55, %v670_v59 }
0x10f3   :  { %v678_v60 = vmul.f32 %v675_v57, %v625_v38 }
0x1138   :  { %v681_v56 = vpop.permute.xlu2 %680 }
0x1139   :  { %v683_v3 = vmul.f32 %v681_v56, %v675_v57 }
0x113b   :  { %685 = vrot.lane.b32.xlu0 %v683_v3, %s853_s6 }
0x11ad   :  { %v686_v61 = vpop.permute.xlu0 %685 }
0x11ae   :  { %v688_v62 = vadd.f32 %v686_v61, %v678_v60 }
0x11b0   :  { %848 = vtanh.f32 %v688_v62 }
0x11b6   :  { %v849_v63 = vpop.eup %848 }
0x11b7   :  { %691 = vrot.lane.b32.xlu1 %v849_v63, %s853_s6 }
0x1229   :  { %v692_v6 = vpop.permute.xlu1 %691 }
0x122a   :  { %v694_v20 = vmul.f32 %v692_v6, %v675_v57 }
0x122c   :  { %v695_v7 = vmax.f32 %v694_v20, 0.0 }
0x122e   :  { %703 = vrot.lane.b32.xlu2 %v695_v7, %s854_s11 }
0x1288   :  { %v704_v8 = vpop.permute.xlu2 %703 }
0x1289   :  { %765 = vmatmul.msk.f32.vlgmr.msra.gmra.mxu3 %vm192_vm6, %v704_v8 }
0x130c   :  { %v724_v10 = vpop.f32.mrf.mxu3 }
0x130d   :  { %v725_v11 = vadd.f32 %v724_v10, %v701_v9 }
0x130f   :  { %728 = vst.msk [vmem:[%s1087_s4] sm:$0xff] %vm727_vm14, %v725_v11 }

</bundles_post_ra>
